<compile_context>
chip_gen: v7x
topology: tpu7x:2x2x1
jax: 0.10.0
libtpu: 0.0.40
codegen_flags: <defaults>
</compile_context>

<pallas_src>
import functools

import jax
import jax.numpy as jnp
from jax import lax
from jax.experimental import pallas as pl
from jax.experimental.pallas import tpu as pltpu

_LANES = 128
_MAX_INPUT_BLOCK_BYTES = 6 * 1024 * 1024   # per-input block ceiling (~4-6 MiB sweet spot)
_VMEM_MARGIN_BYTES = 4 * 1024 * 1024       # headroom for output buffers / misc
_TEMP_SLABS = 12                           # est. live f32 (s_tile,128) working slabs
_UNROLL_C_MAX = 64                         # python-unroll channel loop up to this C


def _ce_kernel(logits_ref, label_ref, out_ref, *, s_tile, s_valid, needs_mask,
               out_rows, work_dtype):
    """Per-(n, t) soft-label CE partial sum, written as a lane-dense (out_rows,128) slab."""
    C = logits_ref.shape[1]

    def xc(c):
        return logits_ref[0, c].astype(work_dtype)

    def yc(c):
        return label_ref[0, c].astype(work_dtype)

    zero = jnp.zeros((s_tile, _LANES), jnp.float32)

    if C <= _UNROLL_C_MAX:
        # Pass 1: per-pixel running max over channels (pure VPU, small temporaries).
        m = xc(0)
        for c in range(1, C):
            m = jnp.maximum(m, xc(c))
        # Pass 2: accumulate per-pixel exp-sum, label-sum, label*(x-m)-sum in f32.
        sum_exp, sum_y, sum_yz = zero, zero, zero
        for c in range(C):
            z = xc(c) - m
            y = yc(c)
            sum_exp = sum_exp + jnp.exp(z).astype(jnp.float32)
            sum_y = sum_y + y.astype(jnp.float32)
            sum_yz = sum_yz + (y * z).astype(jnp.float32)
    else:
        # Large C: bounded trace size; dynamic index on a non-layout leading dim.
        m = lax.fori_loop(1, C, lambda c, acc: jnp.maximum(acc, xc(c)), xc(0))

        def acc_body(c, carry):
            se, sy, syz = carry
            z = xc(c) - m
            y = yc(c)
            return (se + jnp.exp(z).astype(jnp.float32),
                    sy + y.astype(jnp.float32),
                    syz + (y * z).astype(jnp.float32))

        sum_exp, sum_y, sum_yz = lax.fori_loop(0, C, acc_body, (zero, zero, zero))

    # loss = lse * sum_c(y) - sum_c(y*(x-m))  ==  -sum_c y_c * log_softmax(x)_c
    loss = jnp.log(sum_exp) * sum_y - sum_yz            # (s_tile, 128) f32

    def finalize(vals):
        if out_rows == s_tile:
            red = vals
        else:
            # (s_tile,128) -> (s_tile/out_rows, out_rows, 128): vreg-aligned
            # relabeling; reduction over the leading (non-layout) dim = VPU adds.
            red = jnp.sum(vals.reshape(s_tile // out_rows, out_rows, _LANES), axis=0)
        out_ref[...] = red[None, None, :, :]

    if needs_mask:
        t = pl.program_id(1)
        last = pl.num_programs(1) - 1

        @pl.when(t == last)
        def _():
            # Per-pixel mask BEFORE any cross-pixel reduction (OOB rows may be garbage).
            row = jax.lax.broadcasted_iota(jnp.int32, (s_tile, _LANES), 0)
            finalize(jnp.where(t * s_tile + row < s_valid, loss, 0.0))

        @pl.when(t != last)
        def _():
            finalize(loss)
    else:
        finalize(loss)


def _vmem_limit_bytes():
    """Generation-aware VMEM budget: ~96 MiB on v5e/v6e (128 MiB), ~48 MiB on v7x (64 MiB)."""
    try:
        cap = int(pltpu.get_tpu_info().vmem_capacity_bytes)
    except Exception:
        cap = 64 * 1024 * 1024
    return min(cap * 3 // 4, 96 * 1024 * 1024)


def _choose_s_tile(S, C, itemsize, vmem_limit):
    """Largest s_tile whose footprint (2 inputs x 2 bufs + working slabs) fits the budget."""
    sub = 8 * max(1, 4 // itemsize)                     # packed sublane height: 8/16/32
    per_row_inputs = 4 * C * _LANES * itemsize          # 2 inputs x 2 pipeline buffers
    per_row_temps = _TEMP_SLABS * _LANES * 4            # f32 accumulators + op temporaries
    budget = vmem_limit - _VMEM_MARGIN_BYTES
    max_s = min(budget // (per_row_inputs + per_row_temps),
                _MAX_INPUT_BLOCK_BYTES // (C * _LANES * itemsize))
    if S <= max_s:
        return S
    tile = (max_s // sub) * sub
    if tile == 0:
        # TODO(synk): split C across an extra grid axis with an online (running max /
        # rescaled exp-sum) formulation for very large channel counts.
        raise ValueError(
            f"Channel dim C={C} too large for the VMEM budget ({vmem_limit} bytes).")
    return tile


def softmax_cross_entropy_v2(logits, label, reduction="mean"):
    """Forward pass of SoftmaxCrossEntropyV2 (soft labels over dim=1).

    logits, label: (N, C, H, W).  Returns float32 scalar for 'mean' / 'sum'.
    """
    if logits.shape != label.shape:
        raise ValueError("logits and label must have the same shape")
    N, C, H, W = logits.shape
    HW = H * W
    n_valid = N * HW

    lg = logits.reshape(N, C, HW)     # contiguous-dim merge: free reshape
    lb = label.reshape(N, C, HW)

    bulk = (HW // _LANES) * _LANES
    tail = HW - bulk

    total = jnp.zeros((), jnp.float32)
    if tail:
        # <=127 trailing pixels per image: plain JAX (negligible), so the big tensors
        # never take a padding round-trip through HBM.
        lg_t = lax.slice_in_dim(lg, bulk, HW, axis=2).astype(jnp.float32)
        lb_t = lax.slice_in_dim(lb, bulk, HW, axis=2).astype(jnp.float32)
        total = total + jnp.sum(-jax.nn.log_softmax(lg_t, axis=1) * lb_t,
                                dtype=jnp.float32)
        if bulk:
            # TODO(synk): only hit when H*W % 128 != 0; this slices (copies) the bulk once.
            lg = lax.slice_in_dim(lg, 0, bulk, axis=2)
            lb = lax.slice_in_dim(lb, 0, bulk, axis=2)

    if bulk:
        S = bulk // _LANES
        lg4 = lg.reshape(N, C, S, _LANES)
        lb4 = lb.reshape(N, C, S, _LANES)

        itemsize = jnp.dtype(logits.dtype).itemsize
        vmem_limit = _vmem_limit_bytes()
        s_tile = _choose_s_tile(S, C, itemsize, vmem_limit)
        T = -(-S // s_tile)
        needs_mask = (T * s_tile != S)
        out_rows = 8 if s_tile % 8 == 0 else s_tile
        # bf16 inputs: keep max/sub/exp/y*z in bf16 (bf16 VALU/EUP on v6e/v7x),
        # accumulate the three per-pixel sums in f32.
        work_dtype = jnp.bfloat16 if logits.dtype == jnp.bfloat16 else jnp.float32

        kernel = functools.partial(
            _ce_kernel, s_tile=s_tile, s_valid=S, needs_mask=needs_mask,
            out_rows=out_rows, work_dtype=work_dtype)

        total_elems = N * C * S * _LANES
        cost = pl.CostEstimate(
            flops=8 * total_elems,
            transcendentals=total_elems + N * S * _LANES,   # exp per elem + log per pixel
            bytes_accessed=2 * total_elems * itemsize + N * T * out_rows * _LANES * 4,
        )

        partials = pl.pallas_call(
            kernel,
            out_shape=jax.ShapeDtypeStruct((N, T, out_rows, _LANES), jnp.float32),
            grid_spec=pltpu.PrefetchScalarGridSpec(
                num_scalar_prefetch=0,
                grid=(N, T),
                in_specs=[
                    pl.BlockSpec((1, C, s_tile, _LANES), lambda n, t: (n, 0, t, 0)),
                    pl.BlockSpec((1, C, s_tile, _LANES), lambda n, t: (n, 0, t, 0)),
                ],
                out_specs=pl.BlockSpec((1, 1, out_rows, _LANES),
                                       lambda n, t: (n, t, 0, 0)),
            ),
            compiler_params=pltpu.CompilerParams(
                dimension_semantics=("parallel", "parallel"),
                vmem_limit_bytes=vmem_limit,
            ),
            cost_estimate=cost,
        )(lg4, lb4)

        total = total + jnp.sum(partials, dtype=jnp.float32)

    if reduction == "sum":
        return total
    if reduction == "mean":
        return total / jnp.float32(n_valid)
    # TODO(synk): reduction='none' (per-pixel (N,H,W) loss map) not implemented here.
    raise NotImplementedError("reduction='none' not implemented")


if __name__ == "__main__":
    key = jax.random.PRNGKey(0)
    k1, k2 = jax.random.split(key)

    N, C, H, W = 2, 4, 16, 16
    logits = jax.random.normal(k1, (N, C, H, W), dtype=jnp.float32)
    # soft labels over the channel dim (same shape as logits, sums to 1 over dim=1)
    label = jax.nn.softmax(
        jax.random.normal(k2, (N, C, H, W), dtype=jnp.float32), axis=1
    )

    loss = jax.block_until_ready(
        softmax_cross_entropy_v2(logits, label, reduction="mean")
    )
    # pure-JAX reference (matches torch.log_softmax(...).neg().mul(label).sum(1).mean())
    ref = jnp.mean(jnp.sum(-jax.nn.log_softmax(logits, axis=1) * label, axis=1))
    assert jnp.allclose(loss, ref, rtol=1e-5, atol=1e-5), (loss, ref)

    loss_sum = jax.block_until_ready(
        softmax_cross_entropy_v2(logits, label, reduction="sum")
    )
    ref_sum = jnp.sum(jnp.sum(-jax.nn.log_softmax(logits, axis=1) * label, axis=1))
    assert jnp.allclose(loss_sum, ref_sum, rtol=1e-5, atol=1e-5), (loss_sum, ref_sum)

    print("KERNEL_OK")
</pallas_src>

<mosaic_0001>
module attributes {stable_mosaic.version = 11 : i64} {
  func.func @_ce_kernel(%arg0: i32, %arg1: i32, %arg2: memref<1x4x2x128xf32, #tpu.memory_space<vmem>>, %arg3: memref<1x4x2x128xf32, #tpu.memory_space<vmem>>, %arg4: memref<1x1x2x128xf32, #tpu.memory_space<vmem>>) attributes {dimension_semantics = [#tpu.dimension_semantics<parallel>, #tpu.dimension_semantics<parallel>], iteration_bounds = array<i64: 2, 1>, scalar_prefetch = 0 : i64, scratch_operands = 0 : i64, tpu.core_type = #tpu.core_type<tc>, window_params = [{transform_indices = @transform_0, window_bounds = array<i64: 1, 4, 2, 128>}, {transform_indices = @transform_1, window_bounds = array<i64: 1, 4, 2, 128>}, {transform_indices = @transform_2, window_bounds = array<i64: 1, 1, 2, 128>}]} {
    %cst = arith.constant 0.000000e+00 : f32
    %0 = vector.broadcast %cst : f32 to vector<2x128xf32>
    %c0 = arith.constant 0 : index
    %c0_0 = arith.constant 0 : index
    %c0_1 = arith.constant 0 : index
    %c0_2 = arith.constant 0 : index
    %1 = vector.load %arg2[%c0, %c0_0, %c0_1, %c0_2] : memref<1x4x2x128xf32, #tpu.memory_space<vmem>>, vector<1x1x2x128xf32>
    %2 = vector.shape_cast %1 : vector<1x1x2x128xf32> to vector<2x128xf32>
    %c0_3 = arith.constant 0 : index
    %c1 = arith.constant 1 : index
    %c0_4 = arith.constant 0 : index
    %c0_5 = arith.constant 0 : index
    %3 = vector.load %arg2[%c0_3, %c1, %c0_4, %c0_5] : memref<1x4x2x128xf32, #tpu.memory_space<vmem>>, vector<1x1x2x128xf32>
    %4 = vector.shape_cast %3 : vector<1x1x2x128xf32> to vector<2x128xf32>
    %5 = arith.maximumf %2, %4 : vector<2x128xf32>
    %c0_6 = arith.constant 0 : index
    %c2 = arith.constant 2 : index
    %c0_7 = arith.constant 0 : index
    %c0_8 = arith.constant 0 : index
    %6 = vector.load %arg2[%c0_6, %c2, %c0_7, %c0_8] : memref<1x4x2x128xf32, #tpu.memory_space<vmem>>, vector<1x1x2x128xf32>
    %7 = vector.shape_cast %6 : vector<1x1x2x128xf32> to vector<2x128xf32>
    %8 = arith.maximumf %5, %7 : vector<2x128xf32>
    %c0_9 = arith.constant 0 : index
    %c3 = arith.constant 3 : index
    %c0_10 = arith.constant 0 : index
    %c0_11 = arith.constant 0 : index
    %9 = vector.load %arg2[%c0_9, %c3, %c0_10, %c0_11] : memref<1x4x2x128xf32, #tpu.memory_space<vmem>>, vector<1x1x2x128xf32>
    %10 = vector.shape_cast %9 : vector<1x1x2x128xf32> to vector<2x128xf32>
    %11 = arith.maximumf %8, %10 : vector<2x128xf32>
    %c0_12 = arith.constant 0 : index
    %c0_13 = arith.constant 0 : index
    %c0_14 = arith.constant 0 : index
    %c0_15 = arith.constant 0 : index
    %12 = vector.load %arg2[%c0_12, %c0_13, %c0_14, %c0_15] : memref<1x4x2x128xf32, #tpu.memory_space<vmem>>, vector<1x1x2x128xf32>
    %13 = vector.shape_cast %12 : vector<1x1x2x128xf32> to vector<2x128xf32>
    %14 = arith.subf %13, %11 : vector<2x128xf32>
    %c0_16 = arith.constant 0 : index
    %c0_17 = arith.constant 0 : index
    %c0_18 = arith.constant 0 : index
    %c0_19 = arith.constant 0 : index
    %15 = vector.load %arg3[%c0_16, %c0_17, %c0_18, %c0_19] : memref<1x4x2x128xf32, #tpu.memory_space<vmem>>, vector<1x1x2x128xf32>
    %16 = vector.shape_cast %15 : vector<1x1x2x128xf32> to vector<2x128xf32>
    %17 = math.exp %14 : vector<2x128xf32>
    %18 = arith.addf %0, %17 : vector<2x128xf32>
    %19 = arith.addf %0, %16 : vector<2x128xf32>
    %20 = arith.mulf %16, %14 : vector<2x128xf32>
    %21 = arith.addf %0, %20 : vector<2x128xf32>
    %c0_20 = arith.constant 0 : index
    %c1_21 = arith.constant 1 : index
    %c0_22 = arith.constant 0 : index
    %c0_23 = arith.constant 0 : index
    %22 = vector.load %arg2[%c0_20, %c1_21, %c0_22, %c0_23] : memref<1x4x2x128xf32, #tpu.memory_space<vmem>>, vector<1x1x2x128xf32>
    %23 = vector.shape_cast %22 : vector<1x1x2x128xf32> to vector<2x128xf32>
    %24 = arith.subf %23, %11 : vector<2x128xf32>
    %c0_24 = arith.constant 0 : index
    %c1_25 = arith.constant 1 : index
    %c0_26 = arith.constant 0 : index
    %c0_27 = arith.constant 0 : index
    %25 = vector.load %arg3[%c0_24, %c1_25, %c0_26, %c0_27] : memref<1x4x2x128xf32, #tpu.memory_space<vmem>>, vector<1x1x2x128xf32>
    %26 = vector.shape_cast %25 : vector<1x1x2x128xf32> to vector<2x128xf32>
    %27 = math.exp %24 : vector<2x128xf32>
    %28 = arith.addf %18, %27 : vector<2x128xf32>
    %29 = arith.addf %19, %26 : vector<2x128xf32>
    %30 = arith.mulf %26, %24 : vector<2x128xf32>
    %31 = arith.addf %21, %30 : vector<2x128xf32>
    %c0_28 = arith.constant 0 : index
    %c2_29 = arith.constant 2 : index
    %c0_30 = arith.constant 0 : index
    %c0_31 = arith.constant 0 : index
    %32 = vector.load %arg2[%c0_28, %c2_29, %c0_30, %c0_31] : memref<1x4x2x128xf32, #tpu.memory_space<vmem>>, vector<1x1x2x128xf32>
    %33 = vector.shape_cast %32 : vector<1x1x2x128xf32> to vector<2x128xf32>
    %34 = arith.subf %33, %11 : vector<2x128xf32>
    %c0_32 = arith.constant 0 : index
    %c2_33 = arith.constant 2 : index
    %c0_34 = arith.constant 0 : index
    %c0_35 = arith.constant 0 : index
    %35 = vector.load %arg3[%c0_32, %c2_33, %c0_34, %c0_35] : memref<1x4x2x128xf32, #tpu.memory_space<vmem>>, vector<1x1x2x128xf32>
    %36 = vector.shape_cast %35 : vector<1x1x2x128xf32> to vector<2x128xf32>
    %37 = math.exp %34 : vector<2x128xf32>
    %38 = arith.addf %28, %37 : vector<2x128xf32>
    %39 = arith.addf %29, %36 : vector<2x128xf32>
    %40 = arith.mulf %36, %34 : vector<2x128xf32>
    %41 = arith.addf %31, %40 : vector<2x128xf32>
    %c0_36 = arith.constant 0 : index
    %c3_37 = arith.constant 3 : index
    %c0_38 = arith.constant 0 : index
    %c0_39 = arith.constant 0 : index
    %42 = vector.load %arg2[%c0_36, %c3_37, %c0_38, %c0_39] : memref<1x4x2x128xf32, #tpu.memory_space<vmem>>, vector<1x1x2x128xf32>
    %43 = vector.shape_cast %42 : vector<1x1x2x128xf32> to vector<2x128xf32>
    %44 = arith.subf %43, %11 : vector<2x128xf32>
    %c0_40 = arith.constant 0 : index
    %c3_41 = arith.constant 3 : index
    %c0_42 = arith.constant 0 : index
    %c0_43 = arith.constant 0 : index
    %45 = vector.load %arg3[%c0_40, %c3_41, %c0_42, %c0_43] : memref<1x4x2x128xf32, #tpu.memory_space<vmem>>, vector<1x1x2x128xf32>
    %46 = vector.shape_cast %45 : vector<1x1x2x128xf32> to vector<2x128xf32>
    %47 = math.exp %44 : vector<2x128xf32>
    %48 = arith.addf %38, %47 : vector<2x128xf32>
    %49 = arith.addf %39, %46 : vector<2x128xf32>
    %50 = arith.mulf %46, %44 : vector<2x128xf32>
    %51 = arith.addf %41, %50 : vector<2x128xf32>
    %52 = math.log %48 : vector<2x128xf32>
    %53 = arith.mulf %52, %49 : vector<2x128xf32>
    %54 = arith.subf %53, %51 : vector<2x128xf32>
    %55 = vector.shape_cast %54 : vector<2x128xf32> to vector<1x1x2x128xf32>
    %c0_44 = arith.constant 0 : index
    %c0_45 = arith.constant 0 : index
    %c0_46 = arith.constant 0 : index
    %c0_47 = arith.constant 0 : index
    %56 = vector.load %arg4[%c0_44, %c0_45, %c0_46, %c0_47] : memref<1x1x2x128xf32, #tpu.memory_space<vmem>>, vector<1x1x2x128xf32>
    tpu.vector_store %arg4[%c0_44, %c0_45, %c0_46, %c0_47], %55 {strides = array<i32>} : memref<1x1x2x128xf32, #tpu.memory_space<vmem>>, vector<1x1x2x128xf32>,
    return
  }
  func.func @transform_0(%arg0: i32, %arg1: i32) -> (i32, i32, i32, i32) {
    %c0_i32 = arith.constant 0 : i32
    %c0_i32_0 = arith.constant 0 : i32
    %c0_i32_1 = arith.constant 0 : i32
    return %arg0, %c0_i32, %arg1, %c0_i32_0 : i32, i32, i32, i32
  }
  func.func @transform_1(%arg0: i32, %arg1: i32) -> (i32, i32, i32, i32) {
    %c0_i32 = arith.constant 0 : i32
    %c0_i32_0 = arith.constant 0 : i32
    %c0_i32_1 = arith.constant 0 : i32
    return %arg0, %c0_i32, %arg1, %c0_i32_0 : i32, i32, i32, i32
  }
  func.func @transform_2(%arg0: i32, %arg1: i32) -> (i32, i32, i32, i32) {
    %c0_i32 = arith.constant 0 : i32
    %c0_i32_0 = arith.constant 0 : i32
    %c0_i32_1 = arith.constant 0 : i32
    return %arg0, %arg1, %c0_i32, %c0_i32_0 : i32, i32, i32, i32
  }
}

</mosaic_0001>

<bundles_post_ra>
// kernel: tpu_custom_call.1
= control target key start
LH: loop header
LB: loop body
LE: loop exit
PB: predicated region body
PF: predicated region fallthrough
CT: control target
= control target key end

     0   :  { %7 = vsyncpa [#allocation3], 0  ;;  %s907_s0 = inlined_call_operand.hbm [shape: f32[2,4,2,128], index: 0, kind: input, shape index: {}]   ;;  %s908_s1 = inlined_call_operand.hbm [shape: f32[2,4,2,128], index: 1, kind: input, shape index: {}]   ;;  %s909_s2 = inlined_call_operand.hbm [shape: f32[2,1,2,128], index: 2, kind: output, shape index: {}]  }
   0x1   :  { %9 = vsyncpa [#allocation3 + $0x1], 0 }
   0x2   :  { %10 = vsyncpa [#allocation6], 0 }
   0x3   :  { %12 = vsyncpa [#allocation6 + $0x1], 0 }
   0x4   :  { %13 = vsyncpa [#allocation4], 0 }
   0x5   :  { %15 = vsyncpa [#allocation4 + $0x1], 0  ;;  %s666_s9 = smov 0   ;;  %s668_s10 = smov 0  }
   0x6   :  { %s670_s11 = smov 0   ;;  %s672_s12 = smov 0  }
   0x7   :  { %s674_s13 = smov 0   ;;  %s676_s14 = smov 0  }
   0x8 LB: > { %s393_s15 = sadd.s32 4294967295, %s644_s14   ;;  %s394_s16 = sadd.s32 4294967294, %s644_s14   ;;  %s644_s14 = sphi %s676_s14, %s21_s14   ;;  %s640_s13 = sphi %s674_s13, %s927_s13   ;;  %s636_s12 = sphi %s672_s12, %s926_s12   ;;  %s632_s11 = sphi %s670_s11, %s925_s11   ;;  %s628_s10 = sphi %s668_s10, %s924_s10   ;;  %s624_s9 = sphi %s666_s9, %s923_s9  }
   0x9   : > { %s33_s17 = sadd.s32 1, %s640_s13  ;;  %s42_s18 = sadd.s32 1, %s632_s11 }
   0xa   : > { %p35_p0 = scmp.ge.s32.totalorder %s33_s17, 2  ;;  %p49_p1 = scmp.ne.s32.totalorder %s632_s11, %s628_s10 }
   0xb   : > { %p50_p2 = scmp.eq.s32.totalorder %s644_s14, 0  ;;  %p55_p3 = scmp.ne.s32.totalorder %s628_s10, %s624_s9 }
   0xc   : > { %s929_s17 = smov (%p35_p0, %s33_s17), 0  ;;  %p56_p5 = scmp.eq.s32.totalorder %s393_s15, 0 }
   0xd   : > { %p707_p4 = por %p50_p2, %p49_p1  ;;  %s37_s20 = ssub.s32 %s640_s13, %s929_s17 }
   0xe   : > { %p109_p6 = scmp.eq.s32.totalorder %s393_s15, 1  ;;  %p40_p7 = scmp.eq.s32.totalorder %s37_s20, 0 }
   0xf   : > { %p713_p8 = por %p56_p5, %p55_p3  ;;  %p115_p10 = scmp.eq.s32.totalorder %s394_s16, 1 }
  0x10   : > { %p717_p9 = por %p109_p6, %p49_p1  ;;  %p436_p13 = scmp.lt.s32.totalorder %s644_s14, 2 }
  0x11   : > { %s913_s21 = scalar_select %p713_p8, 1, 0 }
  0x12   : > { %s914_s22 = scalar_select %p717_p9, 1, 0 }
  0x13   : > { %s722_s23 = scalar_select %p40_p7, %s632_s11, %s42_s18  }
  0x14   : > { %p724_p11 = por %p115_p10, %p55_p3  ;;  %s731_s25 = sand.u32 1, %s632_s11  }
  0x15   : > { %s397_s26 = sshll.u32 %s731_s25, 3  ;;  %s417_s27 = sshll.u32 %s640_s13, 7 }
  0x16   : > { %s915_s24 = scalar_select %p724_p11, 1, 0 }
  0x17   : > { %s740_s30 = scalar_lea.hbm %s907_s0, %s417_s27  ;;  %s139_s3 = scalar_lea.vmem [#allocation2], %s397_s26 }
  0x18   : > { %s147_s4 = sshll.u32 %s139_s3, 4  ;;  %p748_p0 = pnand %p436_p13, %p707_p4  ;;  %s744_s4 = int_to_ptr.vmem [resolvable:$true] %s147_s4 }
  0x19   : > { %s136_s6 = scalar_lea.sflag [#allocation3], %s731_s25  ;;  %s498_s7 = scalar_lea.hbm %s740_s30, 128 }
  0x1a   : > { %p499_p2 = scmp.ne.s32.totalorder %s740_s30, %s498_s7  ;;  %p500_p3 = pneg %p748_p0 }
  0x1b   : > { %s503_s16 = scalar_lea.hbm %s907_s0, 256  ;;  %p504_p4 = scmp.lt.u32.totalorder %s740_s30, %s907_s0 }
  0x1c   : > { %p501_p5 = pnand %p500_p3, %p499_p2  ;;  %p505_p7 = scmp.lt.u32.totalorder %s503_s16, %s498_s7 }
  0x1d   : > { %p507_p13 = scmp.lt.u32.totalorder %s498_s7, %s740_s30 }
  0x1e   : > { %p502_p6 = pneg %p501_p5  ;;  %p506_p10 = por %p505_p7, %p504_p4 }
  0x20   : > { %p508_p12 = por %p507_p13, %p506_p10 }
  0x22   : > { %p509_p1 = pnand %p508_p12, %p502_p6 }
  0x24   : > { %512 = shalt.err (!%p509_p1)
}
  0x25   : > { %s513_s20 = scalar_lea.vmem %s744_s4, 128  ;;  %s646_s28 = smov [#allocation2]  }
  0x26   : > { %p514_p2 = scmp.ne.s32.totalorder %s744_s4, %s513_s20  ;;  %s518_s29 = sshll.u32 %s646_s28, 4  ;;  %s519_s29 = int_to_ptr.vmem [resolvable:$false] %s518_s29 }
  0x27   : > { %s520_s3 = scalar_lea.vmem %s519_s29, 256  ;;  %p521_p9 = scmp.lt.s32.totalorder %s744_s4, %s519_s29 }
  0x28   : > { %p516_p5 = pnand %p514_p2, %p500_p3  ;;  %p522_p4 = scmp.lt.s32.totalorder %s520_s3, %s513_s20 }
  0x2a   : > { %p517_p11 = pneg %p516_p5  ;;  %p523_p7 = por %p522_p4, %p521_p9 }
  0x2c   : > { %p524_p10 = pnand %p523_p7, %p517_p11 }
  0x2e   : > { %527 = shalt.err (!%p524_p10)
}
  0x2f   : > { %s647_s7 = smov 32   ;;  %s648_s8 = smov 2  }
  0x30   : > { %428 = dma.hbm_to_vmem [thread:$0]  (!%p748_p0), %s740_s30, 128, %s744_s4, %s136_s6, %s647_s7, %s647_s7, %s648_s8  }
  0x31   : > { %p177_p9 = scmp.lt.s32.totalorder %s644_s14, 3  ;;  %s790_s18 = scalar_lea.hbm %s908_s1, %s417_s27 }
  0x32   : > { %p917_p11 = scmp.ge.s32.totalorder %s644_s14, 1  ;;  %s161_s20 = scalar_lea.vmem [#allocation5], %s397_s26 }
  0x33   : > { %s169_s28 = sshll.u32 %s161_s20, 4  ;;  %s158_s30 = scalar_lea.sflag [#allocation6], %s731_s25  ;;  %s800_s28 = int_to_ptr.vmem [resolvable:$true] %s169_s28 }
  0x34   : > { %p794_p12 = pnand %p917_p11, %p177_p9  ;;  %s528_s4 = scalar_lea.hbm %s790_s18, 128 }
  0x35   : > { %p529_p1 = scmp.ne.s32.totalorder %s790_s18, %s528_s4  ;;  %s533_s29 = scalar_lea.hbm %s908_s1, 256 }
  0x36   : > { %p534_p2 = scmp.lt.u32.totalorder %s790_s18, %s908_s1  ;;  %p535_p5 = scmp.lt.u32.totalorder %s533_s29, %s528_s4 }
  0x37   : > { %p531_p6 = pnand %p529_p1, %p500_p3  ;;  %p537_p7 = scmp.lt.u32.totalorder %s528_s4, %s790_s18 }
  0x38   : > { %p536_p4 = por %p535_p5, %p534_p2 }
  0x39   : > { %p532_p13 = pneg %p531_p6 }
  0x3a   : > { %p538_p10 = por %p537_p7, %p536_p4 }
  0x3c   : > { %p539_p9 = pnand %p538_p10, %p532_p13 }
  0x3e   : > { %542 = shalt.err (!%p539_p9)
}
  0x3f   : > { %s543_s26 = scalar_lea.vmem %s800_s28, 128  ;;  %s649_s16 = smov [#allocation5]  }
  0x40   : > { %p544_p11 = scmp.ne.s32.totalorder %s800_s28, %s543_s26  ;;  %s548_s20 = sshll.u32 %s649_s16, 4  ;;  %s549_s20 = int_to_ptr.vmem [resolvable:$false] %s548_s20 }
  0x41   : > { %s550_s27 = scalar_lea.vmem %s549_s20, 256  ;;  %p551_p8 = scmp.lt.s32.totalorder %s800_s28, %s549_s20 }
  0x42   : > { %p546_p1 = pnand %p544_p11, %p500_p3  ;;  %p552_p2 = scmp.lt.s32.totalorder %s550_s27, %s543_s26 }
  0x44   : > { %p547_p6 = pneg %p546_p1  ;;  %p553_p5 = por %p552_p2, %p551_p8 }
  0x46   : > { %p554_p4 = pnand %p553_p5, %p547_p6 }
  0x48   : > { %557 = shalt.err (!%p554_p4)
}
  0x49   : > { %431 = dma.hbm_to_vmem [thread:$0]  (!%p748_p0), %s790_s18, 128, %s800_s28, %s158_s30, %s647_s7, %s647_s7, %s648_s8  }
  0x4a   : > { %181 = sbr.rel (%p794_p12) target bundleno = 144 (0x90), region = 28  ;;  %s834_s4 = sand.u32 (!%p794_p12), 1, %s628_s10  }
  0x4b   : > { %s404_s6 = sshll.u32 (!%p794_p12), %s834_s4, 3  ;;  %s184_s29 = scalar_lea.sflag (!%p794_p12), [#allocation3], %s834_s4 }
  0x4c   : > { %s187_s5 = scalar_lea.vmem (!%p794_p12), [#allocation2], %s404_s6  ;;  %p919_p8 = scmp.ne.s32.totalorder (!%p794_p12), %s913_s21, 0 }
  0x51   : > { %611 = dma.done.wait (%p919_p8), %s184_s29, 128  }
  0x52   : > { %613 = vsyncadd (%p919_p8), %s184_s29, 4294967168  ;;  %s193_s25 = scalar_lea.sflag [#allocation6], %s834_s4  ;;  %s843_s7 = scalar_lea.vmem [#allocation5], %s404_s6 }
  0x53   : > { %615 = dma.done.wait (%p919_p8), %s193_s25, 128  }
  0x54   : > { %617 = vsyncadd (%p919_p8), %s193_s25, 4294967168  ;;  %v222_v0 = vld [vmem:[%s187_s5] sm:$0x3]  ;;  %v407_v1 = vld [vmem:[%s187_s5 + $0x2] sm:$0x3]  ;;  %s406_s21 = sshll.u32 %s834_s4, 1 }
  0x55   : > { %v408_v2 = vld [vmem:[%s187_s5 + $0x4] sm:$0x3]  ;;  %v225_v3 = vmax.f32 %v222_v0, %v407_v1  ;;  %v409_v4 = vld [vmem:[%s187_s5 + $0x6] sm:$0x3]  ;;  %v233_v20 = vld [vmem:[%s843_s7] sm:$0x3] }
  0x56   : > { %v410_v21 = vld [vmem:[%s843_s7 + $0x2] sm:$0x3]  ;;  %v411_v26 = vld [vmem:[%s843_s7 + $0x4] sm:$0x3]  ;;  %v412_v30 = vld [vmem:[%s843_s7 + $0x6] sm:$0x3] }
  0x57   : > { %v228_v5 = vmax.f32 %v225_v3, %v408_v2  ;;  %v246_v27 = vadd.f32 %v410_v21, %v233_v20  ;;  %s221_s8 = scalar_lea.vmem [#allocation7], %s406_s21  ;;  %s414_s19 = sshll.u32 %s636_s12, 5 }
  0x58   : > { %s287_s18 = sshll.u32 %s221_s8, 4  ;;  %s860_s3 = scalar_lea.hbm %s909_s2, %s414_s19  ;;  %s855_s18 = int_to_ptr.vmem [resolvable:$true] %s287_s18 }
  0x59   : > { %v231_v6 = vmax.f32 %v228_v5, %v409_v4  ;;  %v255_v31 = vadd.f32 %v411_v26, %v246_v27  ;;  %s273_s15 = scalar_lea.sflag [#allocation4], %s834_s4  ;;  %s558_s26 = scalar_lea.vmem %s855_s18, 32 }
  0x5a   : > { %p559_p0 = scmp.ne.s32.totalorder %s855_s18, %s558_s26  ;;  %p920_p3 = scmp.ne.s32.totalorder %s914_s22, 0 }
  0x5b   : > { %v232_v7 = vsub.f32 %v222_v0, %v231_v6  ;;  %v240_v8 = vsub.f32 %v407_v1, %v231_v6  ;;  %v249_v9 = vsub.f32 %v408_v2, %v231_v6  ;;  %v258_v10 = vsub.f32 %v409_v4, %v231_v6  ;;  %s650_s12 = smov [#allocation7]  }
  0x5c   : > { %v264_v34 = vadd.f32 %v412_v30, %v255_v31  ;;  %p560_p12 = pnand %p559_p0, %p920_p3  ;;  %s562_s16 = sshll.u32 %s650_s12, 4  ;;  %s563_s16 = int_to_ptr.vmem [resolvable:$false] %s562_s16 }
  0x5d   : > { %v234_v11 = vmul.f32 1.442695, %v232_v7  ;;  %v243_v12 = vmul.f32 1.442695, %v240_v8  ;;  %v252_v13 = vmul.f32 1.442695, %v249_v9  ;;  %v238_v24 = vmul.f32 %v233_v20, %v232_v7  ;;  %p565_p7 = scmp.lt.s32.totalorder %s855_s18, %s563_s16 }
  0x5e   : > { %v261_v14 = vmul.f32 1.442695, %v258_v10  ;;  %v247_v25 = vmul.f32 %v410_v21, %v240_v8  ;;  %v256_v29 = vmul.f32 %v411_v26, %v249_v9  ;;  %v265_v33 = vmul.f32 %v412_v30, %v258_v10  ;;  %p561_p13 = pneg %p560_p12  ;;  %s564_s20 = scalar_lea.vmem %s563_s16, 64 }
  0x5f   : > { %488 = vpow2.f32 %v234_v11  ;;  %p566_p10 = scmp.lt.s32.totalorder %s564_s20, %s558_s26 }
  0x60   : > { %490 = vpow2.f32 %v243_v12  ;;  %v248_v28 = vadd.f32 %v247_v25, %v238_v24 }
  0x61   : > { %492 = vpow2.f32 %v252_v13  ;;  %p567_p9 = por %p566_p10, %p565_p7 }
  0x62   : > { %494 = vpow2.f32 %v261_v14  ;;  %v257_v32 = vadd.f32 %v256_v29, %v248_v28 }
  0x63   : > { %p568_p11 = pnand %p567_p9, %p561_p13 }
  0x64   : > { %v266_v36 = vadd.f32 %v265_v33, %v257_v32 }
  0x69   : > { %v489_v15 = vpop.eup %488 }
  0x6a   : > { %v491_v16 = vpop.eup %490 }
  0x6b   : > { %v493_v17 = vpop.eup %492  ;;  %v245_v18 = vadd.f32 %v491_v16, %v489_v15 }
  0x6c   : > { %v495_v19 = vpop.eup %494 }
  0x6d   : > { %v254_v22 = vadd.f32 %v493_v17, %v245_v18 }
  0x6f   : > { %v263_v23 = vadd.f32 %v495_v19, %v254_v22 }
  0x71   : > { %496 = vlog2.f32 %v263_v23 }
  0x7b   : > { %v497_v35 = vpop.eup %496 }
  0x7c   : > { %v268_v37 = vmul.f32 0.6931472, %v497_v35 }
  0x7e   : > { %v269_v38 = vmul.f32 %v268_v37, %v264_v34 }
  0x80   : > { %v270_v39 = vsub.f32 %v269_v38, %v266_v36 }
  0x82   : > { %271 = vst [vmem:[%s221_s8] sm:$0x3] %v270_v39 }
  0x83   : > { %571 = shalt.err (!%p568_p11)
}
  0x84   : > { %s572_s27 = scalar_lea.hbm %s860_s3, 32  ;;  %s576_s29 = scalar_lea.hbm %s909_s2, 64 }
  0x85   : > { %p573_p1 = scmp.ne.s32.totalorder %s860_s3, %s572_s27  ;;  %p577_p5 = scmp.lt.u32.totalorder %s860_s3, %s909_s2 }
  0x86   : > { %p578_p4 = scmp.lt.u32.totalorder %s576_s29, %s572_s27  ;;  %p580_p0 = scmp.lt.u32.totalorder %s572_s27, %s860_s3 }
  0x87   : > { %p574_p6 = pnand %p573_p1, %p920_p3 }
  0x88   : > { %p579_p8 = por %p578_p4, %p577_p5 }
  0x89   : > { %p575_p2 = pneg %p574_p6 }
  0x8a   : > { %p581_p12 = por %p580_p0, %p579_p8 }
  0x8c   : > { %p582_p13 = pnand %p581_p12, %p575_p2 }
  0x8e   : > { %585 = shalt.err (!%p582_p13)
}
  0x8f   : > { %423 = dma.vmem_to_hbm [thread:$0]  (%p920_p3), %s855_s18, 32, %s860_s3, %s273_s15  }
  0x90 PF: > { %s299_s7 = sand.u32 1, %s624_s9   ;;  %p921_p7 = scmp.ne.s32.totalorder %s915_s24, 0 }
  0x91   : > { %p922_p10 = scmp.ge.s32.totalorder %s644_s14, 2  ;;  %s300_s21 = scalar_lea.sflag [#allocation4], %s299_s7 }
  0x93   : > { %p433_p9 = pnand %p922_p10, %p921_p7 }
  0x95   : > { %619 = dma.done.wait (!%p433_p9), %s300_s21, 32  }
  0x96   : > { %621 = vsyncadd (!%p433_p9), %s300_s21, 4294967264  ;;  %s21_s14 = sadd.s32 1, %s644_s14   ;;  %s923_s9 = smov %s628_s10 }
  0x97   : > { %p18_p11 = scmp.ge.s32.totalorder %s21_s14, 4   ;;  %s924_s10 = smov %s632_s11 }
  0x98   : > { %s925_s11 = smov %s722_s23  ;;  %s926_s12 = smov %s640_s13 }
  0x99   : > { %s927_s13 = smov %s929_s17  ;;  %20 = sbr.rel (!%p18_p11) target bundleno = 8 (0x8), region = 92 }
  0xa0   :  { %305 = vsyncpa [#allocation3], 1 }
  0xa1   :  { %307 = vsyncpa [#allocation3 + $0x1], 1 }
  0xa2   :  { %308 = vsyncpa [#allocation6], 1 }
  0xa3   :  { %310 = vsyncpa [#allocation6 + $0x1], 1 }
  0xa4   :  { %311 = vsyncpa [#allocation4], 1 }
  0xa5   :  { %313 = vsyncpa [#allocation4 + $0x1], 1 }

</bundles_post_ra>
